<compile_context>
chip_gen: v6e
topology: v6e:2x2x1
jax: 0.10.0
libtpu: 0.0.40
codegen_flags: <defaults>
</compile_context>

<pallas_src>
import functools

import jax
import jax.numpy as jnp
from jax.experimental import pallas as pl
from jax.experimental.pallas import tpu as pltpu

LANE = 128
SUBLANE = 8


def _round_up(n, m):
    return ((n + m - 1) // m) * m


def _relu_in_bf16():
    """bf16 ReLU only where the VPU has a bf16 path (v6e / v7x)."""
    try:
        kind = jax.devices()[0].device_kind.lower()
    except Exception:
        return False
    return ("v6" in kind) or ("v7" in kind)


def _choose_batch_tiling(b):
    """Pick (b_pad, tile_b).

    Prefer large tiles (fewer ~0.35us grid steps) and >=2 grid steps (v7x dual
    TensorCore), but cap batch-padding waste at <= 1/4 of the padded batch.
    Falls back to a single full-batch block for tiny batches.
    """
    for t in (512, 256, 128, 64, 32, 16, 8):
        b_pad = _round_up(b, t)
        steps = b_pad // t
        waste = b_pad - b
        if steps >= 2 and 4 * waste <= b_pad:
            return b_pad, t
    b_pad = _round_up(b, SUBLANE)
    return b_pad, b_pad            # single grid step; block == full array


# ----------------------------------------------------------------------------
# Kernel
# ----------------------------------------------------------------------------
def deepnet_kernel(x_ref,
                   w1_ref, b1_ref,
                   w2_ref, b2_ref,
                   w3_ref, b3_ref,
                   w4_ref, b4_ref,
                   o_ref, *, relu_bf16):
    """Fused 4-layer MLP forward for one batch tile.

    f32 input cast to bf16 in-kernel, bf16 MXU operands, f32 accumulation and
    bias add.  BN scale/shift already folded into W/b; dropout = identity.
    """
    h = x_ref[...].astype(jnp.bfloat16)          # (TILE_B, D_in) unpadded

    def layer(h_bf16, w_ref, b_ref):
        a = jnp.dot(h_bf16, w_ref[...],
                    preferred_element_type=jnp.float32) + b_ref[...]
        if relu_bf16:
            # ReLU commutes with the downcast; halves VALU work on v6e/v7x.
            return jnp.maximum(a.astype(jnp.bfloat16), 0)
        return jnp.maximum(a, 0.0).astype(jnp.bfloat16)

    h = layer(h, w1_ref, b1_ref)
    h = layer(h, w2_ref, b2_ref)
    h = layer(h, w3_ref, b3_ref)
    o_ref[...] = (jnp.dot(h, w4_ref[...], preferred_element_type=jnp.float32)
                  + b4_ref[...]).astype(o_ref.dtype)


# ----------------------------------------------------------------------------
# pallas_call wrapper
# ----------------------------------------------------------------------------
@functools.partial(jax.jit, static_argnames=("tile_b", "relu_bf16"))
def _deepnet_call(x, w1, b1, w2, b2, w3, b3, w4, b4, *, tile_b, relu_bf16):
    b_pad, d_in = x.shape
    d_out = w4.shape[1]
    grid = (b_pad // tile_b,)

    x_map = lambda i: (i, 0)        # batch-tiled activations / output
    const_map = lambda i: (0, 0)    # weights/biases resident across the grid

    # Constant-index operands: single-buffered (no pipelining benefit).
    param_specs = [
        pl.BlockSpec(a.shape, const_map, pipeline_mode=pl.Buffered(1))
        for a in (w1, b1, w2, b2, w3, b3, w4, b4)
    ]

    flops = 2 * int(b_pad) * sum(int(w.shape[0]) * int(w.shape[1])
                                 for w in (w1, w2, w3, w4))
    bytes_accessed = int(
        x.size * x.dtype.itemsize
        + sum(int(a.size) * a.dtype.itemsize
              for a in (w1, b1, w2, b2, w3, b3, w4, b4))
        + int(b_pad) * int(d_out) * 4)

    return pl.pallas_call(
        functools.partial(deepnet_kernel, relu_bf16=relu_bf16),
        out_shape=jax.ShapeDtypeStruct((b_pad, d_out), jnp.float32),
        grid=grid,
        in_specs=[pl.BlockSpec((tile_b, d_in), x_map)] + param_specs,
        out_specs=pl.BlockSpec((tile_b, d_out), x_map),
        compiler_params=pltpu.CompilerParams(
            dimension_semantics=("parallel",)),
        cost_estimate=pl.CostEstimate(flops=flops, transcendentals=0,
                                      bytes_accessed=bytes_accessed),
    )(x, w1, b1, w2, b2, w3, b3, w4, b4)


def deepnet_forward(x, folded_params):
    """Run the fused kernel; pad the batch only if needed and slice it back."""
    b, _ = x.shape
    b_pad, tile_b = _choose_batch_tiling(b)
    relu_bf16 = _relu_in_bf16()

    if b_pad != b:
        x_in = jnp.pad(x, ((0, b_pad - b), (0, 0)))   # single fused pad op
    else:
        x_in = x                                       # fast path: zero copies

    out = _deepnet_call(x_in, *folded_params, tile_b=tile_b,
                        relu_bf16=relu_bf16)
    return out[:b] if b_pad != b else out


# ----------------------------------------------------------------------------
# Parameters (PyTorch-equivalent) and wrapper-side folding / padding
# ----------------------------------------------------------------------------
def init_params(key, D_in, HS, D_out, batchnorm=False):
    """nn.Linear-style init (U(-1/sqrt(fan_in), +)); BN1d with nontrivial
    gamma/beta/running stats when batchnorm=True (inference mode)."""
    dims = [D_in, HS[0], HS[1], HS[2], D_out]
    keys = jax.random.split(key, 20)
    ki = 0
    layers = []
    for layer in range(4):
        fan_in, fan_out = dims[layer], dims[layer + 1]
        bound = float(fan_in) ** -0.5
        w = jax.random.uniform(keys[ki], (fan_in, fan_out), jnp.float32,
                               -bound, bound); ki += 1   # stored (in, out)
        b = jax.random.uniform(keys[ki], (fan_out,), jnp.float32,
                               -bound, bound); ki += 1
        p = {"w": w, "b": b}
        if layer < 3 and batchnorm:
            p["gamma"] = 1.0 + 0.1 * jax.random.normal(keys[ki], (fan_out,)); ki += 1
            p["beta"] = 0.1 * jax.random.normal(keys[ki], (fan_out,)); ki += 1
            p["mean"] = 0.05 * jax.random.normal(keys[ki], (fan_out,)); ki += 1
            p["var"] = jnp.abs(1.0 + 0.1 * jax.random.normal(keys[ki], (fan_out,))); ki += 1
        layers.append(p)
    return layers


def fold_and_pad_params(layers, batchnorm, eps=1e-5):
    """Fold inference-mode BN into W/b; pad only the *hidden* widths to 128.

    Layer-0 fan_in (D_in) and layer-3 fan_out (D_out) stay unpadded so the
    kernel's input/output HBM traffic carries no zero padding.  Each layer's
    fan_in is padded to match the previous layer's padded fan_out.  W is cast
    to bf16 (MXU operand dtype); bias stays f32.
    """
    folded = []
    prev_pad = None
    n_layers = len(layers)
    for idx, p in enumerate(layers):
        w, b = p["w"], p["b"]
        if batchnorm and idx < 3:
            scale = p["gamma"] / jnp.sqrt(p["var"] + eps)
            shift = p["beta"] - p["mean"] * scale
            w = w * scale[None, :]
            b = b * scale + shift
        fan_in, fan_out = w.shape
        fin_p = fan_in if prev_pad is None else prev_pad
        fout_p = fan_out if idx == n_layers - 1 else _round_up(fan_out, LANE)
        w_p = jnp.zeros((fin_p, fout_p), jnp.float32).at[:fan_in, :fan_out].set(w)
        b_p = jnp.zeros((1, fout_p), jnp.float32).at[0, :fan_out].set(b)
        folded.append(w_p.astype(jnp.bfloat16))  # MXU operand dtype
        folded.append(b_p)                       # bias stays f32
        prev_pad = fout_p
    return tuple(folded)


# ----------------------------------------------------------------------------
# References
# ----------------------------------------------------------------------------
def reference_forward_folded(x, folded, relu_bf16):
    """Pure-JAX reference with the same folded/padded bf16 params as the kernel."""
    (w1, b1, w2, b2, w3, b3, w4, b4) = folded
    h = x.astype(jnp.bfloat16)
    for w, b in ((w1, b1), (w2, b2), (w3, b3)):
        a = jnp.dot(h, w, preferred_element_type=jnp.float32) + b
        if relu_bf16:
            h = jnp.maximum(a.astype(jnp.bfloat16), 0)
        else:
            h = jnp.maximum(a, 0.0).astype(jnp.bfloat16)
    return jnp.dot(h, w4, preferred_element_type=jnp.float32) + b4


def reference_forward_f32(x, layers, batchnorm, eps=1e-5):
    """Full-precision semantic reference (matches the PyTorch eval forward)."""
    h = x
    for idx, p in enumerate(layers):
        h = h @ p["w"] + p["b"]
        if idx < 3:
            if batchnorm:
                h = (h - p["mean"]) / jnp.sqrt(p["var"] + eps) * p["gamma"] + p["beta"]
            h = jnp.maximum(h, 0.0)   # dropout = identity in eval mode
    return h


# ----------------------------------------------------------------------------
if __name__ == "__main__":
    # Small, forward-consistent shapes: batch=8, D_in=32, HS=(64,48,32), D_out=16
    B, D_in, HS, D_out = 8, 32, (64, 48, 32), 16
    dropout_rate = 0.1   # eval mode -> identity
    batchnorm = True     # exercise the BN fold with real running stats

    key = jax.random.PRNGKey(0)
    kx, kp, kx2 = jax.random.split(key, 3)
    x = jax.random.normal(kx, (B, D_in), jnp.float32)

    layers = init_params(kp, D_in, HS, D_out, batchnorm=batchnorm)
    folded = fold_and_pad_params(layers, batchnorm=batchnorm)
    relu_bf16 = _relu_in_bf16()

    out = jax.block_until_ready(deepnet_forward(x, folded))
    assert out.shape == (B, D_out)

    # Kernel matches a same-precision (bf16 matmul, folded params) JAX reference.
    ref_exact = reference_forward_folded(x, folded, relu_bf16)
    assert jnp.allclose(out, ref_exact, atol=1e-2, rtol=1e-2), \
        "mismatch vs folded bf16 reference"

    # And matches the f32 PyTorch-semantics reference within bf16 tolerance.
    ref_f32 = reference_forward_f32(x, layers, batchnorm=batchnorm)
    assert jnp.allclose(out, ref_f32, atol=5e-2, rtol=5e-2), \
        "mismatch vs f32 semantic reference"

    # Second case: exercises batch padding + a multi-step "parallel" grid.
    B2 = 24
    x2 = jax.random.normal(kx2, (B2, D_in), jnp.float32)
    out2 = jax.block_until_ready(deepnet_forward(x2, folded))
    assert out2.shape == (B2, D_out)
    ref2 = reference_forward_folded(x2, folded, relu_bf16)
    assert jnp.allclose(out2, ref2, atol=1e-2, rtol=1e-2), \
        "mismatch vs folded bf16 reference (padded/multi-step grid case)"

    print("KERNEL_OK")
</pallas_src>

<mosaic_0001>
module attributes {stable_mosaic.version = 11 : i64} {
  func.func @deepnet_kernel(%arg0: i32, %arg1: memref<8x32xf32, #tpu.memory_space<vmem>>, %arg2: memref<32x128xbf16, #tpu.memory_space<vmem>>, %arg3: memref<1x128xf32, #tpu.memory_space<vmem>>, %arg4: memref<128x128xbf16, #tpu.memory_space<vmem>>, %arg5: memref<1x128xf32, #tpu.memory_space<vmem>>, %arg6: memref<128x128xbf16, #tpu.memory_space<vmem>>, %arg7: memref<1x128xf32, #tpu.memory_space<vmem>>, %arg8: memref<128x16xbf16, #tpu.memory_space<vmem>>, %arg9: memref<1x16xf32, #tpu.memory_space<vmem>>, %arg10: memref<8x16xf32, #tpu.memory_space<vmem>>) attributes {dimension_semantics = [#tpu.dimension_semantics<parallel>], iteration_bounds = array<i64: 1>, scalar_prefetch = 0 : i64, scratch_operands = 0 : i64, tpu.core_type = #tpu.core_type<tc>, window_params = [{transform_indices = @transform_0, window_bounds = array<i64: 8, 32>}, {pipeline_mode = #tpu.pipeline_mode<synchronous>, transform_indices = @transform_1, window_bounds = array<i64: 32, 128>}, {pipeline_mode = #tpu.pipeline_mode<synchronous>, transform_indices = @transform_2, window_bounds = array<i64: 1, 128>}, {pipeline_mode = #tpu.pipeline_mode<synchronous>, transform_indices = @transform_3, window_bounds = array<i64: 128, 128>}, {pipeline_mode = #tpu.pipeline_mode<synchronous>, transform_indices = @transform_4, window_bounds = array<i64: 1, 128>}, {pipeline_mode = #tpu.pipeline_mode<synchronous>, transform_indices = @transform_5, window_bounds = array<i64: 128, 128>}, {pipeline_mode = #tpu.pipeline_mode<synchronous>, transform_indices = @transform_6, window_bounds = array<i64: 1, 128>}, {pipeline_mode = #tpu.pipeline_mode<synchronous>, transform_indices = @transform_7, window_bounds = array<i64: 128, 16>}, {pipeline_mode = #tpu.pipeline_mode<synchronous>, transform_indices = @transform_8, window_bounds = array<i64: 1, 16>}, {transform_indices = @transform_9, window_bounds = array<i64: 8, 16>}]} {
    %c0 = arith.constant 0 : index
    %c0_0 = arith.constant 0 : index
    %0 = vector.load %arg1[%c0, %c0_0] : memref<8x32xf32, #tpu.memory_space<vmem>>, vector<8x32xf32>
    %1 = arith.truncf %0 : vector<8x32xf32> to vector<8x32xbf16>
    %c0_1 = arith.constant 0 : index
    %c0_2 = arith.constant 0 : index
    %2 = vector.load %arg2[%c0_1, %c0_2] : memref<32x128xbf16, #tpu.memory_space<vmem>>, vector<32x128xbf16>
    %cst = arith.constant dense<0.000000e+00> : vector<8x128xf32>
    %3 = tpu.matmul %1, %2, %cst {dimension_numbers = #tpu.dot_dimension_numbers<[1], [0], [0], [1], [0, 0, 1, 1], [], []>} : vector<8x32xbf16>, vector<32x128xbf16>, vector<8x128xf32> -> vector<8x128xf32>
    %c0_3 = arith.constant 0 : index
    %c0_4 = arith.constant 0 : index
    %4 = vector.load %arg3[%c0_3, %c0_4] : memref<1x128xf32, #tpu.memory_space<vmem>>, vector<1x128xf32>
    %5 = vector.broadcast %4 : vector<1x128xf32> to vector<8x128xf32>
    %6 = arith.addf %3, %5 : vector<8x128xf32>
    %cst_5 = arith.constant 0.000000e+00 : f32
    %7 = vector.broadcast %cst_5 : f32 to vector<8x128xf32>
    %8 = arith.maximumf %6, %7 : vector<8x128xf32>
    %9 = arith.truncf %8 : vector<8x128xf32> to vector<8x128xbf16>
    %c0_6 = arith.constant 0 : index
    %c0_7 = arith.constant 0 : index
    %10 = vector.load %arg4[%c0_6, %c0_7] : memref<128x128xbf16, #tpu.memory_space<vmem>>, vector<128x128xbf16>
    %cst_8 = arith.constant dense<0.000000e+00> : vector<8x128xf32>
    %11 = tpu.matmul %9, %10, %cst_8 {dimension_numbers = #tpu.dot_dimension_numbers<[1], [0], [0], [1], [0, 0, 1, 1], [], []>} : vector<8x128xbf16>, vector<128x128xbf16>, vector<8x128xf32> -> vector<8x128xf32>
    %c0_9 = arith.constant 0 : index
    %c0_10 = arith.constant 0 : index
    %12 = vector.load %arg5[%c0_9, %c0_10] : memref<1x128xf32, #tpu.memory_space<vmem>>, vector<1x128xf32>
    %13 = vector.broadcast %12 : vector<1x128xf32> to vector<8x128xf32>
    %14 = arith.addf %11, %13 : vector<8x128xf32>
    %cst_11 = arith.constant 0.000000e+00 : f32
    %15 = vector.broadcast %cst_11 : f32 to vector<8x128xf32>
    %16 = arith.maximumf %14, %15 : vector<8x128xf32>
    %17 = arith.truncf %16 : vector<8x128xf32> to vector<8x128xbf16>
    %c0_12 = arith.constant 0 : index
    %c0_13 = arith.constant 0 : index
    %18 = vector.load %arg6[%c0_12, %c0_13] : memref<128x128xbf16, #tpu.memory_space<vmem>>, vector<128x128xbf16>
    %cst_14 = arith.constant dense<0.000000e+00> : vector<8x128xf32>
    %19 = tpu.matmul %17, %18, %cst_14 {dimension_numbers = #tpu.dot_dimension_numbers<[1], [0], [0], [1], [0, 0, 1, 1], [], []>} : vector<8x128xbf16>, vector<128x128xbf16>, vector<8x128xf32> -> vector<8x128xf32>
    %c0_15 = arith.constant 0 : index
    %c0_16 = arith.constant 0 : index
    %20 = vector.load %arg7[%c0_15, %c0_16] : memref<1x128xf32, #tpu.memory_space<vmem>>, vector<1x128xf32>
    %21 = vector.broadcast %20 : vector<1x128xf32> to vector<8x128xf32>
    %22 = arith.addf %19, %21 : vector<8x128xf32>
    %cst_17 = arith.constant 0.000000e+00 : f32
    %23 = vector.broadcast %cst_17 : f32 to vector<8x128xf32>
    %24 = arith.maximumf %22, %23 : vector<8x128xf32>
    %25 = arith.truncf %24 : vector<8x128xf32> to vector<8x128xbf16>
    %c0_18 = arith.constant 0 : index
    %c0_19 = arith.constant 0 : index
    %26 = vector.load %arg8[%c0_18, %c0_19] : memref<128x16xbf16, #tpu.memory_space<vmem>>, vector<128x16xbf16>
    %cst_20 = arith.constant dense<0.000000e+00> : vector<8x16xf32>
    %27 = tpu.matmul %25, %26, %cst_20 {dimension_numbers = #tpu.dot_dimension_numbers<[1], [0], [0], [1], [0, 0, 1, 1], [], []>} : vector<8x128xbf16>, vector<128x16xbf16>, vector<8x16xf32> -> vector<8x16xf32>
    %c0_21 = arith.constant 0 : index
    %c0_22 = arith.constant 0 : index
    %28 = vector.load %arg9[%c0_21, %c0_22] : memref<1x16xf32, #tpu.memory_space<vmem>>, vector<1x16xf32>
    %29 = vector.broadcast %28 : vector<1x16xf32> to vector<8x16xf32>
    %30 = arith.addf %27, %29 : vector<8x16xf32>
    %c0_23 = arith.constant 0 : index
    %c0_24 = arith.constant 0 : index
    %31 = vector.load %arg10[%c0_23, %c0_24] : memref<8x16xf32, #tpu.memory_space<vmem>>, vector<8x16xf32>
    tpu.vector_store %arg10[%c0_23, %c0_24], %30 {strides = array<i32>} : memref<8x16xf32, #tpu.memory_space<vmem>>, vector<8x16xf32>,
    return
  }
  func.func @transform_0(%arg0: i32) -> (i32, i32) {
    %c0_i32 = arith.constant 0 : i32
    %c0_i32_0 = arith.constant 0 : i32
    return %arg0, %c0_i32 : i32, i32
  }
  func.func @transform_1(%arg0: i32) -> (i32, i32) {
    %c0_i32 = arith.constant 0 : i32
    %c0_i32_0 = arith.constant 0 : i32
    %c0_i32_1 = arith.constant 0 : i32
    return %c0_i32, %c0_i32_0 : i32, i32
  }
  func.func @transform_2(%arg0: i32) -> (i32, i32) {
    %c0_i32 = arith.constant 0 : i32
    %c0_i32_0 = arith.constant 0 : i32
    %c0_i32_1 = arith.constant 0 : i32
    return %c0_i32, %c0_i32_0 : i32, i32
  }
  func.func @transform_3(%arg0: i32) -> (i32, i32) {
    %c0_i32 = arith.constant 0 : i32
    %c0_i32_0 = arith.constant 0 : i32
    %c0_i32_1 = arith.constant 0 : i32
    return %c0_i32, %c0_i32_0 : i32, i32
  }
  func.func @transform_4(%arg0: i32) -> (i32, i32) {
    %c0_i32 = arith.constant 0 : i32
    %c0_i32_0 = arith.constant 0 : i32
    %c0_i32_1 = arith.constant 0 : i32
    return %c0_i32, %c0_i32_0 : i32, i32
  }
  func.func @transform_5(%arg0: i32) -> (i32, i32) {
    %c0_i32 = arith.constant 0 : i32
    %c0_i32_0 = arith.constant 0 : i32
    %c0_i32_1 = arith.constant 0 : i32
    return %c0_i32, %c0_i32_0 : i32, i32
  }
  func.func @transform_6(%arg0: i32) -> (i32, i32) {
    %c0_i32 = arith.constant 0 : i32
    %c0_i32_0 = arith.constant 0 : i32
    %c0_i32_1 = arith.constant 0 : i32
    return %c0_i32, %c0_i32_0 : i32, i32
  }
  func.func @transform_7(%arg0: i32) -> (i32, i32) {
    %c0_i32 = arith.constant 0 : i32
    %c0_i32_0 = arith.constant 0 : i32
    %c0_i32_1 = arith.constant 0 : i32
    return %c0_i32, %c0_i32_0 : i32, i32
  }
  func.func @transform_8(%arg0: i32) -> (i32, i32) {
    %c0_i32 = arith.constant 0 : i32
    %c0_i32_0 = arith.constant 0 : i32
    %c0_i32_1 = arith.constant 0 : i32
    return %c0_i32, %c0_i32_0 : i32, i32
  }
  func.func @transform_9(%arg0: i32) -> (i32, i32) {
    %c0_i32 = arith.constant 0 : i32
    %c0_i32_0 = arith.constant 0 : i32
    return %arg0, %c0_i32 : i32, i32
  }
}

</mosaic_0001>

<bundles_post_ra>
// kernel: _deepnet_call.1
= control target key start
LH: loop header
LB: loop body
LE: loop exit
PB: predicated region body
PF: predicated region fallthrough
CT: control target
= control target key end

     0   :  { %14 = vsyncpa [#allocation3], 0  ;;  %s879_s0 = inlined_call_operand.vmem [shape: f32[8,32], index: 0, kind: input, shape index: {}]   ;;  %s880_s1 = inlined_call_operand.hbm [shape: bf16[32,128], index: 1, kind: input, shape index: {}]   ;;  %s881_s2 = inlined_call_operand.vmem [shape: f32[1,128], index: 2, kind: input, shape index: {}]   ;;  %s882_s3 = inlined_call_operand.vmem [shape: bf16[128,128], index: 3, kind: input, shape index: {}]   ;;  %s883_s4 = inlined_call_operand.vmem [shape: f32[1,128], index: 4, kind: input, shape index: {}]   ;;  %s884_s5 = inlined_call_operand.hbm [shape: bf16[128,128], index: 5, kind: input, shape index: {}]   ;;  %s885_s6 = inlined_call_operand.vmem [shape: f32[1,128], index: 6, kind: input, shape index: {}]   ;;  %s886_s7 = inlined_call_operand.vmem [shape: bf16[128,16], index: 7, kind: input, shape index: {}]   ;;  %s887_s8 = inlined_call_operand.vmem [shape: f32[1,16], index: 8, kind: input, shape index: {}]   ;;  %s888_s9 = inlined_call_operand.hbm [shape: f32[8,16], index: 9, kind: output, shape index: {}]  }
   0x1   :  { %15 = vsyncpa [#allocation6], 0 }
   0x2   :  { %16 = vsyncpa [#allocation4], 0  ;;  %s716_s30 = smov [#allocation2]  }
   0x3   :  { %s24_s10 = sshll.u32 %s716_s30, 4  ;;  %s25_s10 = int_to_ptr.vmem [resolvable:$true] %s24_s10 }
   0x4   :  { %s658_s11 = scalar_lea.vmem %s25_s10, 256  ;;  %p663_p1 = scmp.lt.s32.totalorder %s25_s10, %s25_s10 }
   0x5   :  { %p659_p0 = scmp.ne.s32.totalorder %s25_s10, %s658_s11  ;;  %p664_p2 = scmp.lt.s32.totalorder %s658_s11, %s658_s11 }
   0x7   :  { %p665_p3 = por %p664_p2, %p663_p1 }
   0x9   :  { %p666_p4 = pnand %p665_p3, %p659_p0 }
   0xb   :  { %669 = shalt.err (!%p666_p4)
}
   0xc   :  { %s717_s12 = smov 64   ;;  %s718_s13 = smov 4  }
   0xd   :  { %30 = dma.hbm_to_vmem [thread:$0]  %s880_s1, 256, %s25_s10, [#allocation3], %s717_s12, %s717_s12, %s718_s13  }
   0xe   :  { %s719_s16 = smov [#allocation5]  }
   0xf   :  { %s42_s17 = sshll.u32 %s719_s16, 4  ;;  %s43_s17 = int_to_ptr.vmem [resolvable:$true] %s42_s17 }
  0x10   :  { %s678_s18 = scalar_lea.vmem %s43_s17, 1024  ;;  %p683_p6 = scmp.lt.s32.totalorder %s43_s17, %s43_s17 }
  0x11   :  { %p679_p5 = scmp.ne.s32.totalorder %s43_s17, %s678_s18  ;;  %p684_p7 = scmp.lt.s32.totalorder %s678_s18, %s678_s18 }
  0x13   :  { %p685_p8 = por %p684_p7, %p683_p6 }
  0x15   :  { %p686_p9 = pnand %p685_p8, %p679_p5 }
  0x17   :  { %689 = shalt.err (!%p686_p9)
}
  0x18   :  { %48 = dma.hbm_to_vmem [thread:$0]  %s884_s5, 1024, %s43_s17, [#allocation6], %s717_s12, %s717_s12, %s718_s13  }
  0x19   :  { %710 = dma.done.wait [#allocation3], 256  }
  0x1a   :  { %711 = vsyncadd [#allocation3], 4294967040 }
  0x1b   :  { %712 = dma.done.wait [#allocation6], 1024  }
  0x1c   :  { %713 = vsyncadd [#allocation6], 4294966272  ;;  %v720_v0 = vmov 0.0   ;;  %vm721_vm0 = vmmov 0   ;;  %v624_v1 = vld [vmem:[#allocation2 + $0x8] sm:$0xff]   ;;  %v625_v2 = vld [vmem:[#allocation2] sm:$0xff]  }
  0x1d   :  { %549 = vmatprep.subr.bf16.mxu0 %v720_v0  ;;  %553 = vmatprep.mubr.msk.bf16.mxu0 %vm721_vm0, %v720_v0  ;;  %v62_v3 = vld [vmem:[%s879_s0] sm:$0xff]  ;;  %v626_v4 = vld [vmem:[%s882_s3 + $0x38] sm:$0xff]   ;;  %v627_v6 = vld [vmem:[%s882_s3 + $0x30] sm:$0xff]   ;;  %vm87_vm1 = vcmask 261120   ;;  %s722_s12 = smov [#allocation7]   ;;  %vm470_vm2 = vcmask 130048  }
  0x1e   :  { %557 = vmatprep.subr.bf16.mxu1 %v720_v0  ;;  %573 = vmatprep.mubr.msk.bf16.mxu1 %vm721_vm0, %v720_v0  ;;  %v63_v5 = vpack.c.bf16 %v62_v3, %v62_v3  ;;  %v628_v7 = vld [vmem:[%s882_s3 + $0x28] sm:$0xff]   ;;  %v629_v8 = vld [vmem:[%s882_s3 + $0x20] sm:$0xff]   ;;  %v630_v9 = vld [vmem:[%s882_s3 + $0x18] sm:$0xff]   ;;  %s478_s13 = sshll.u32 %s722_s12, 4  ;;  %s479_s13 = int_to_ptr.vmem [resolvable:$true] %s478_s13 }
  0x1f   :  { %550 = vmatpush3.bf16.msra.mxu0 %v624_v1  ;;  %558 = vmatpush3.bf16.msra.mxu1 %v626_v4  ;;  %v631_v10 = vld [vmem:[%s882_s3 + $0x10] sm:$0xff]   ;;  %v632_v11 = vld [vmem:[%s882_s3 + $0x8] sm:$0xff]   ;;  %v633_v12 = vld [vmem:[%s882_s3] sm:$0xff]   ;;  %p695_p11 = scmp.lt.s32.totalorder %s479_s13, %s479_s13 }
  0x20   :  { %551 = vmatprep.subr.bf16.mxu0 %v720_v0  ;;  %559 = vmatprep.subr.bf16.mxu1 %v720_v0  ;;  %v634_v13 = vld [vmem:[#allocation5 + $0x38] sm:$0xff]   ;;  %v635_v14 = vld [vmem:[#allocation5 + $0x30] sm:$0xff]   ;;  %v636_v15 = vld [vmem:[#allocation5 + $0x28] sm:$0xff]  }
  0x21   :  { %v637_v16 = vld [vmem:[#allocation5 + $0x20] sm:$0xff]   ;;  %v638_v17 = vld [vmem:[#allocation5 + $0x18] sm:$0xff]   ;;  %v639_v18 = vld [vmem:[#allocation5 + $0x10] sm:$0xff]  }
  0x22   :  { %v488_v19 = vld [vmem:[%s881_s2] ss:$0 sm:$0xff]  ;;  %v640_v27 = vld [vmem:[#allocation5 + $0x8] sm:$0xff]   ;;  %v641_v28 = vld [vmem:[#allocation5] sm:$0xff]  }
  0x23   :  { %552 = vmatpush3.bf16.msra.mxu0 %v625_v2  ;;  %560 = vmatpush3.bf16.msra.mxu1 %v627_v6  ;;  %v642_v29 = vld [vmem:[%s886_s7 + $0x38] sm:$0xff]   ;;  %v643_v30 = vld [vmem:[%s886_s7 + $0x30] sm:$0xff]   ;;  %v644_v31 = vld [vmem:[%s886_s7 + $0x28] sm:$0xff]  }
  0x24   :  { %577 = vmatprep.subr.bf16.mxu0 %v720_v0  ;;  %561 = vmatprep.subr.bf16.mxu1 %v720_v0  ;;  %v645_v32 = vld [vmem:[%s886_s7 + $0x20] sm:$0xff]   ;;  %v646_v33 = vld [vmem:[%s886_s7 + $0x18] sm:$0xff]   ;;  %v647_v34 = vld [vmem:[%s886_s7 + $0x10] sm:$0xff]  }
  0x25   :  { %v492_v35 = vld [vmem:[%s883_s4] ss:$0 sm:$0xff]  ;;  %v648_v43 = vld [vmem:[%s886_s7 + $0x8] sm:$0xff]  }
  0x26   :  { %554 = vmatmul.mubr.msk.bf16.vlgmr.msra.gmra.mxu0 %vm87_vm1, %v63_v5  ;;  %v649_v44 = vld [vmem:[%s886_s7] sm:$0xff]  }
  0x27   :  { %593 = vmatprep.mubr.msk.bf16.mxu0 %vm721_vm0, %v720_v0  ;;  %562 = vmatpush3.bf16.msra.mxu1 %v628_v7  ;;  %v501_v45 = vld [vmem:[%s885_s6] ss:$0 sm:$0xff]  ;;  %s690_s6 = scalar_lea.vmem %s479_s13, 128 }
  0x28   :  { %563 = vmatprep.subr.bf16.mxu1 %v720_v0  ;;  %578 = vmatpush3.bf16.msra.mxu0 %v634_v13  ;;  %v510_v53 = vld [vmem:[%s887_s8] ss:$0 sm:$0xff]  ;;  %p691_p10 = scmp.ne.s32.totalorder %s479_s13, %s690_s6  ;;  %p696_p12 = scmp.lt.s32.totalorder %s690_s6, %s690_s6 }
  0x29   :  { %579 = vmatprep.subr.bf16.mxu0 %v720_v0 }
  0x2a   :  { %p697_p13 = por %p696_p12, %p695_p11 }
  0x2b   :  { %564 = vmatpush3.bf16.msra.mxu1 %v629_v8 }
  0x2c   :  { %565 = vmatprep.subr.bf16.mxu1 %v720_v0  ;;  %580 = vmatpush3.bf16.msra.mxu0 %v635_v14  ;;  %p698_p0 = pnand %p697_p13, %p691_p10 }
  0x2d   :  { %581 = vmatprep.subr.bf16.mxu0 %v720_v0 }
  0x2f   :  { %566 = vmatpush3.bf16.msra.mxu1 %v630_v9 }
  0x30   :  { %567 = vmatprep.subr.bf16.mxu1 %v720_v0  ;;  %582 = vmatpush3.bf16.msra.mxu0 %v636_v15 }
  0x31   :  { %583 = vmatprep.subr.bf16.mxu0 %v720_v0 }
  0x33   :  { %568 = vmatpush3.bf16.msra.mxu1 %v631_v10 }
  0x34   :  { %569 = vmatprep.subr.bf16.mxu1 %v720_v0  ;;  %584 = vmatpush3.bf16.msra.mxu0 %v637_v16 }
  0x35   :  { %585 = vmatprep.subr.bf16.mxu0 %v720_v0 }
  0x37   :  { %570 = vmatpush3.bf16.msra.mxu1 %v632_v11 }
  0x38   :  { %571 = vmatprep.subr.bf16.mxu1 %v720_v0  ;;  %586 = vmatpush3.bf16.msra.mxu0 %v638_v17 }
  0x39   :  { %587 = vmatprep.subr.bf16.mxu0 %v720_v0 }
  0x3b   :  { %572 = vmatpush3.bf16.msra.mxu1 %v633_v12 }
  0x3c   :  { %597 = vmatprep.subr.bf16.mxu1 %v720_v0  ;;  %588 = vmatpush3.bf16.msra.mxu0 %v639_v18 }
  0x3d   :  { %589 = vmatprep.subr.bf16.mxu0 %v720_v0 }
  0x40   :  { %590 = vmatpush3.bf16.msra.mxu0 %v640_v27 }
  0x41   :  { %591 = vmatprep.subr.bf16.mxu0 %v720_v0 }
  0x44   :  { %592 = vmatpush3.bf16.msra.mxu0 %v641_v28 }
  0xe6   :  { %v125_v20 = vpop.f32.mrf.mxu0 }
  0xe7   :  { %v126_v21 = vadd.f32 %v488_v19, %v125_v20 }
  0xe8   :  { %v555_v22 = vpop.f32.mrf.mxu0 }
  0xe9   :  { %v131_v23 = vmax.f32 %v126_v21, 0.0 }
  0xea   :  { %v128_v24 = vpop.f32.mrf.mxu0 }
  0xeb   :  { %v132_v25 = vpack.c.bf16 %v131_v23, %v131_v23 }
  0xec   :  { %v556_v26 = vpop.f32.mrf.mxu0 }
  0xed   :  { %574 = vmatmul.mubr.bf16.vlgmr.msra.gmra.mxu1 %v132_v25 }
  0xee   :  { %613 = vmatprep.mubr.msk.bf16.mxu1 %vm721_vm0, %v720_v0  ;;  %598 = vmatpush3.bf16.msra.mxu1 %v642_v29 }
  0xef   :  { %599 = vmatprep.subr.bf16.mxu1 %v720_v0 }
  0xf2   :  { %600 = vmatpush3.bf16.msra.mxu1 %v643_v30 }
  0xf3   :  { %601 = vmatprep.subr.bf16.mxu1 %v720_v0 }
  0xf6   :  { %602 = vmatpush3.bf16.msra.mxu1 %v644_v31 }
  0xf7   :  { %603 = vmatprep.subr.bf16.mxu1 %v720_v0 }
  0xfa   :  { %604 = vmatpush3.bf16.msra.mxu1 %v645_v32 }
  0xfb   :  { %605 = vmatprep.subr.bf16.mxu1 %v720_v0 }
  0xfe   :  { %606 = vmatpush3.bf16.msra.mxu1 %v646_v33 }
  0xff   :  { %607 = vmatprep.subr.bf16.mxu1 %v720_v0 }
 0x102   :  { %608 = vmatpush3.bf16.msra.mxu1 %v647_v34 }
 0x103   :  { %609 = vmatprep.subr.bf16.mxu1 %v720_v0 }
 0x106   :  { %610 = vmatpush3.bf16.msra.mxu1 %v648_v43 }
 0x107   :  { %611 = vmatprep.subr.bf16.mxu1 %v720_v0 }
 0x10a   :  { %612 = vmatpush3.bf16.msra.mxu1 %v649_v44 }
 0x1ad   :  { %v238_v36 = vpop.f32.mrf.mxu1 }
 0x1ae   :  { %v239_v37 = vadd.f32 %v492_v35, %v238_v36 }
 0x1af   :  { %v575_v38 = vpop.f32.mrf.mxu1 }
 0x1b0   :  { %v244_v39 = vmax.f32 %v239_v37, 0.0 }
 0x1b1   :  { %v241_v40 = vpop.f32.mrf.mxu1 }
 0x1b2   :  { %v245_v41 = vpack.c.bf16 %v244_v39, %v244_v39 }
 0x1b3   :  { %v576_v42 = vpop.f32.mrf.mxu1 }
 0x1b4   :  { %594 = vmatmul.mubr.bf16.vlgmr.msra.gmra.mxu0 %v245_v41 }
 0x274   :  { %v351_v46 = vpop.f32.mrf.mxu0 }
 0x275   :  { %v352_v47 = vadd.f32 %v501_v45, %v351_v46 }
 0x276   :  { %v595_v48 = vpop.f32.mrf.mxu0 }
 0x277   :  { %v357_v49 = vmax.f32 %v352_v47, 0.0 }
 0x278   :  { %v354_v50 = vpop.f32.mrf.mxu0 }
 0x279   :  { %v358_v51 = vpack.c.bf16 %v357_v49, %v357_v49 }
 0x27a   :  { %v596_v52 = vpop.f32.mrf.mxu0 }
 0x27b   :  { %614 = vmatmul.mubr.bf16.vlgmr.msra.gmra.mxu1 %v358_v51 }
 0x33b   :  { %v464_v54 = vpop.f32.mrf.mxu1 }
 0x33c   :  { %v465_v55 = vadd.f32 %v510_v53, %v464_v54 }
 0x33d   :  { %v615_v56 = vpop.f32.mrf.mxu1 }
 0x33e   :  { %471 = vst.msk [vmem:[#allocation7] sm:$0xff] %vm470_vm2, %v465_v55 }
 0x33f   :  { %v467_v57 = vpop.f32.mrf.mxu1 }
 0x340   :  { %701 = shalt.err (!%p698_p0)
}
 0x341   :  { %481 = dma.vmem_to_hbm [thread:$0]  %s479_s13, 128, %s888_s9, [#allocation4]   ;;  %v616_v58 = vpop.f32.mrf.mxu1 }
 0x342   :  { %714 = dma.done.wait [#allocation4], 128  }
 0x343   :  { %715 = vsyncadd [#allocation4], 4294967168 }
 0x344   :  { %485 = vsyncpa [#allocation3], 1 }
 0x345   :  { %486 = vsyncpa [#allocation6], 1 }
 0x346   :  { %487 = vsyncpa [#allocation4], 1 }

</bundles_post_ra>
